<compile_context>
chip_gen: v5e
topology: v5e:2x2
jax: 0.10.0
libtpu: 0.0.40
codegen_flags: <defaults>
</compile_context>

<pallas_src>
import functools

import jax
import jax.numpy as jnp
from jax.experimental import pallas as pl
from jax.experimental.pallas import tpu as pltpu


def _round_up(x, m):
    return ((x + m - 1) // m) * m


# ----------------------- generation-aware VMEM budget ------------------------

def _vmem_settings():
    """Returns (tile-footprint budget, compiler vmem limit) in bytes."""
    try:
        cap = int(pltpu.get_tpu_info().vmem_capacity_bytes)
    except Exception:  # interpret mode / older jax: conservative fallback
        cap = 64 * 1024 * 1024
    budget = int(cap * 0.55)                      # what our tiles may occupy
    limit = min(int(cap * 0.75), 112 * 1024 * 1024)
    return budget, limit


# ----------------------------- tile selection --------------------------------

def _choose_tk(k):
    """K tile (multiple of 128) and padded K (multiple of tk)."""
    k128 = _round_up(k, 128)
    tk = min(512, k128)
    return tk, _round_up(k, tk)


def _choose_tn(d_model):
    """N tile (lane-dense multiple of 128) and padded N (multiple of tn)."""
    n128 = _round_up(d_model, 128)
    if n128 <= 512:
        return n128, n128
    return 256, _round_up(d_model, 256)           # 256-wide MXU on v6e/v7x


def _choose_tiles(m, k, d_model, budget):
    tk, k_pad = _choose_tk(k)
    tn, n_pad = _choose_tn(d_model)
    tm = min(512, _round_up(m, 16))               # bf16 sublane granule = 16

    def footprint(tm_, tk_, tn_):
        return (2 * 2 * (tm_ * tk_ + tk_ * tn_)   # bf16 x / w, double-buffered
                + 2 * 4 * tn_                     # f32 bias, double-buffered
                + 2 * 4 * tm_ * tn_               # f32 output, double-buffered
                + 4 * tm_ * tn_)                  # f32 accumulator scratch

    # Shrink K first (keeps MXU-facing M/N tiles big), then M (never < 256),
    # then N.  Halving preserves divisibility of the padded dims.
    while footprint(tm, tk, tn) > budget and tk > 128:
        tk //= 2
    while footprint(tm, tk, tn) > budget and tm > 256:
        tm //= 2
    while footprint(tm, tk, tn) > budget and tn > 128:
        tn //= 2
    return tm, tk, tn, k_pad, n_pad


# ------------------------------ Pallas kernel --------------------------------

def _linear_kernel(x_ref, w_ref, b_ref, o_ref, acc_ref):
    """One (tm, tn) tile of y = x @ w + b, K-tiled with an f32 accumulator."""
    k = pl.program_id(2)

    @pl.when(k == 0)
    def _init():
        acc_ref[...] = jnp.zeros_like(acc_ref)

    acc_ref[...] += jnp.dot(x_ref[...], w_ref[...],
                            preferred_element_type=jnp.float32)

    @pl.when(k == pl.num_programs(2) - 1)
    def _finish():
        o_ref[...] = (acc_ref[...] + b_ref[...]).astype(o_ref.dtype)


def _linear_pallas(x_pad, w_pad, b_pad, *, tm, tk, tn, vmem_limit):
    m_pad, k_pad = x_pad.shape
    _, n_pad = w_pad.shape
    grid = (m_pad // tm, n_pad // tn, k_pad // tk)
    cost = pl.CostEstimate(
        flops=2 * m_pad * k_pad * n_pad,
        transcendentals=0,
        bytes_accessed=(x_pad.size * 2 + w_pad.size * 2
                        + b_pad.size * 4 + m_pad * n_pad * 4),
    )
    return pl.pallas_call(
        _linear_kernel,
        out_shape=jax.ShapeDtypeStruct((m_pad, n_pad), jnp.float32),
        grid=grid,
        in_specs=[
            pl.BlockSpec((tm, tk), lambda m, n, k: (m, k)),   # activations
            pl.BlockSpec((tk, tn), lambda m, n, k: (k, n)),   # weight
            pl.BlockSpec((1, tn), lambda m, n, k: (0, n)),    # bias
        ],
        out_specs=pl.BlockSpec((tm, tn), lambda m, n, k: (m, n)),
        scratch_shapes=[pltpu.VMEM((tm, tn), jnp.float32)],
        compiler_params=pltpu.CompilerParams(
            dimension_semantics=("parallel", "parallel", "arbitrary"),
            vmem_limit_bytes=vmem_limit,
        ),
        cost_estimate=cost,
    )(x_pad, w_pad, b_pad)


# ------------------------------ Module logic ---------------------------------

def _init_linear_params(key, in_features, out_features):
    """Deterministic nn.Linear-style init: U(-1/sqrt(in), 1/sqrt(in))."""
    kw, kb = jax.random.split(key)
    bound = 1.0 / jnp.sqrt(jnp.float32(in_features))
    weight = jax.random.uniform(
        kw, (out_features, in_features), jnp.float32, -bound, bound)
    bias = jax.random.uniform(kb, (out_features,), jnp.float32, -bound, bound)
    return weight, bias


def make_all_psd_embedding_params(key, n_segments, n_channels, n_bands, d_model):
    k1, k2, k3 = jax.random.split(key, 3)
    return {
        "temporal": _init_linear_params(k1, n_channels * n_bands, d_model),
        "spatial": _init_linear_params(k2, n_segments * n_bands, d_model),
        "spectral": _init_linear_params(k3, n_segments * n_channels, d_model),
    }


def prepare_branch_params(params, n_segments, n_channels, n_bands, d_model):
    """Pre-transpose, zero-pad and bf16-cast each branch's linear ONCE."""
    k_dims = {
        "temporal": n_channels * n_bands,
        "spatial": n_segments * n_bands,
        "spectral": n_segments * n_channels,
    }
    _, n_pad = _choose_tn(d_model)
    packed = {}
    for name, k_i in k_dims.items():
        w, b = params[name]                      # w: (d_model, k_i)
        _, k_pad = _choose_tk(k_i)
        w_t = jnp.zeros((k_pad, n_pad), jnp.float32).at[:k_i, :d_model].set(w.T)
        b_p = jnp.zeros((1, n_pad), jnp.float32).at[0, :d_model].set(b)
        packed[name] = (w_t.astype(jnp.bfloat16), b_p)
    return packed


@functools.partial(jax.jit, static_argnames=("d_model",))
def all_psd_embedding_forward(packed, psd, *, d_model):
    """Mirrors AllPSDEmbedding.forward.

    psd: (B, segments, channels, bands) float32
    returns (temporal, spatial, spectral):
        temporal: (B, segments, d_model)
        spatial:  (B, channels, d_model)
        spectral: (B, bands,    d_model)
    """
    B, S, C, Bd = psd.shape
    budget, vmem_limit = _vmem_settings()

    # Branch-specific layout glue (same semantics as torch.transpose+reshape).
    branches = (
        ("temporal", psd.reshape(B * S, C * Bd), B * S, S),
        ("spatial", jnp.transpose(psd, (0, 2, 1, 3)).reshape(B * C, S * Bd),
         B * C, C),
        ("spectral", jnp.transpose(psd, (0, 3, 2, 1)).reshape(B * Bd, S * C),
         B * Bd, Bd),
    )

    outs = []
    for name, x2d, m, dim_sz in branches:
        w_pad, b_pad = packed[name]
        k = x2d.shape[1]
        tm, tk, tn, k_pad, n_pad = _choose_tiles(m, k, d_model, budget)
        assert w_pad.shape == (k_pad, n_pad) and b_pad.shape == (1, n_pad)

        m_pad = _round_up(m, tm)
        x_pad = jnp.pad(x2d.astype(jnp.bfloat16),
                        ((0, m_pad - m), (0, k_pad - k)))
        y = _linear_pallas(x_pad, w_pad, b_pad,
                           tm=tm, tk=tk, tn=tn, vmem_limit=vmem_limit)
        outs.append(y[:m, :d_model].reshape(B, dim_sz, d_model))
    return tuple(outs)


# ---------------------------------- main --------------------------------------

if __name__ == "__main__":
    # Small shapes consistent with the module.
    B, n_segments, n_channels, n_bands, d_model = 2, 8, 4, 16, 32

    key = jax.random.PRNGKey(0)
    k_params, k_input = jax.random.split(key)

    params = make_all_psd_embedding_params(
        k_params, n_segments, n_channels, n_bands, d_model)
    packed = prepare_branch_params(
        params, n_segments, n_channels, n_bands, d_model)
    psd = jax.random.normal(
        k_input, (B, n_segments, n_channels, n_bands), jnp.float32)

    temporal, spatial, spectral = jax.block_until_ready(
        all_psd_embedding_forward(packed, psd, d_model=d_model))

    # Reference with the same bf16 input/weight quantization, f32 accumulate
    # (matches the kernel's MXU numerics; module semantics otherwise identical).
    def ref_branch(x3, w, b):
        xq = x3.astype(jnp.bfloat16).astype(jnp.float32)
        wq = w.astype(jnp.bfloat16).astype(jnp.float32)
        return jnp.einsum("bnk,ok->bno", xq, wq) + b

    ref_t = ref_branch(
        psd.reshape(B, n_segments, n_channels * n_bands), *params["temporal"])
    ref_sp = ref_branch(
        jnp.transpose(psd, (0, 2, 1, 3)).reshape(
            B, n_channels, n_segments * n_bands), *params["spatial"])
    ref_f = ref_branch(
        jnp.transpose(psd, (0, 3, 2, 1)).reshape(
            B, n_bands, n_channels * n_segments), *params["spectral"])

    assert temporal.shape == (B, n_segments, d_model)
    assert spatial.shape == (B, n_channels, d_model)
    assert spectral.shape == (B, n_bands, d_model)
    assert jnp.allclose(temporal, ref_t, atol=1e-4, rtol=1e-4)
    assert jnp.allclose(spatial, ref_sp, atol=1e-4, rtol=1e-4)
    assert jnp.allclose(spectral, ref_f, atol=1e-4, rtol=1e-4)

    print("KERNEL_OK")
</pallas_src>

<mosaic_0001>
module attributes {stable_mosaic.version = 11 : i64} {
  func.func @_linear_kernel(%arg0: i32, %arg1: i32, %arg2: i32, %arg3: memref<16x128xbf16, #tpu.memory_space<vmem>>, %arg4: memref<128x128xbf16, #tpu.memory_space<vmem>>, %arg5: memref<1x128xf32, #tpu.memory_space<vmem>>, %arg6: memref<16x128xf32, #tpu.memory_space<vmem>>, %arg7: memref<16x128xf32, #tpu.memory_space<vmem>>) attributes {dimension_semantics = [#tpu.dimension_semantics<parallel>, #tpu.dimension_semantics<parallel>, #tpu.dimension_semantics<arbitrary>], iteration_bounds = array<i64: 1, 1, 1>, scalar_prefetch = 0 : i64, scratch_operands = 1 : i64, tpu.core_type = #tpu.core_type<tc>, window_params = [{transform_indices = @transform_0, window_bounds = array<i64: 16, 128>}, {transform_indices = @transform_1, window_bounds = array<i64: 128, 128>}, {transform_indices = @transform_2, window_bounds = array<i64: 1, 128>}, {transform_indices = @transform_3, window_bounds = array<i64: 16, 128>}]} {
    %c0_i32 = arith.constant 0 : i32
    %0 = arith.cmpi eq, %arg2, %c0_i32 : i32
    %1 = arith.extui %0 : i1 to i32
    %c0_i32_0 = arith.constant 0 : i32
    %2 = arith.cmpi ne, %1, %c0_i32_0 : i32
    scf.if %2 {
      %cst_10 = arith.constant 0.000000e+00 : f32
      %12 = vector.broadcast %cst_10 : f32 to vector<16x128xf32>
      %c0_11 = arith.constant 0 : index
      %c0_12 = arith.constant 0 : index
      %13 = vector.load %arg7[%c0_11, %c0_12] : memref<16x128xf32, #tpu.memory_space<vmem>>, vector<16x128xf32>
      tpu.vector_store %arg7[%c0_11, %c0_12], %12 {strides = array<i32>} : memref<16x128xf32, #tpu.memory_space<vmem>>, vector<16x128xf32>,
    } else {
    }
    %c0 = arith.constant 0 : index
    %c0_1 = arith.constant 0 : index
    %3 = vector.load %arg7[%c0, %c0_1] : memref<16x128xf32, #tpu.memory_space<vmem>>, vector<16x128xf32>
    %c0_2 = arith.constant 0 : index
    %c0_3 = arith.constant 0 : index
    %4 = vector.load %arg3[%c0_2, %c0_3] : memref<16x128xbf16, #tpu.memory_space<vmem>>, vector<16x128xbf16>
    %c0_4 = arith.constant 0 : index
    %c0_5 = arith.constant 0 : index
    %5 = vector.load %arg4[%c0_4, %c0_5] : memref<128x128xbf16, #tpu.memory_space<vmem>>, vector<128x128xbf16>
    %cst = arith.constant dense<0.000000e+00> : vector<16x128xf32>
    %6 = tpu.matmul %4, %5, %cst {dimension_numbers = #tpu.dot_dimension_numbers<[1], [0], [0], [1], [0, 0, 1, 1], [], []>} : vector<16x128xbf16>, vector<128x128xbf16>, vector<16x128xf32> -> vector<16x128xf32>
    %7 = arith.addf %3, %6 : vector<16x128xf32>
    %c0_6 = arith.constant 0 : index
    %c0_7 = arith.constant 0 : index
    %8 = vector.load %arg7[%c0_6, %c0_7] : memref<16x128xf32, #tpu.memory_space<vmem>>, vector<16x128xf32>
    tpu.vector_store %arg7[%c0_6, %c0_7], %7 {strides = array<i32>} : memref<16x128xf32, #tpu.memory_space<vmem>>, vector<16x128xf32>,
    %c0_i32_8 = arith.constant 0 : i32
    %9 = arith.cmpi eq, %arg2, %c0_i32_8 : i32
    %10 = arith.extui %9 : i1 to i32
    %c0_i32_9 = arith.constant 0 : i32
    %11 = arith.cmpi ne, %10, %c0_i32_9 : i32
    scf.if %11 {
      %c0_10 = arith.constant 0 : index
      %c0_11 = arith.constant 0 : index
      %12 = vector.load %arg7[%c0_10, %c0_11] : memref<16x128xf32, #tpu.memory_space<vmem>>, vector<16x128xf32>
      %c0_12 = arith.constant 0 : index
      %c0_13 = arith.constant 0 : index
      %13 = vector.load %arg5[%c0_12, %c0_13] : memref<1x128xf32, #tpu.memory_space<vmem>>, vector<1x128xf32>
      %14 = vector.broadcast %13 : vector<1x128xf32> to vector<16x128xf32>
      %15 = arith.addf %12, %14 : vector<16x128xf32>
      %c0_14 = arith.constant 0 : index
      %c0_15 = arith.constant 0 : index
      %16 = vector.load %arg6[%c0_14, %c0_15] : memref<16x128xf32, #tpu.memory_space<vmem>>, vector<16x128xf32>
      tpu.vector_store %arg6[%c0_14, %c0_15], %15 {strides = array<i32>} : memref<16x128xf32, #tpu.memory_space<vmem>>, vector<16x128xf32>,
    } else {
    }
    return
  }
  func.func @transform_0(%arg0: i32, %arg1: i32, %arg2: i32) -> (i32, i32) {
    %c0_i32 = arith.constant 0 : i32
    return %arg0, %arg2 : i32, i32
  }
  func.func @transform_1(%arg0: i32, %arg1: i32, %arg2: i32) -> (i32, i32) {
    %c0_i32 = arith.constant 0 : i32
    return %arg2, %arg1 : i32, i32
  }
  func.func @transform_2(%arg0: i32, %arg1: i32, %arg2: i32) -> (i32, i32) {
    %c0_i32 = arith.constant 0 : i32
    %c0_i32_0 = arith.constant 0 : i32
    return %c0_i32, %arg1 : i32, i32
  }
  func.func @transform_3(%arg0: i32, %arg1: i32, %arg2: i32) -> (i32, i32) {
    %c0_i32 = arith.constant 0 : i32
    return %arg0, %arg1 : i32, i32
  }
}

module attributes {stable_mosaic.version = 11 : i64} {
  func.func @_linear_kernel(%arg0: i32, %arg1: i32, %arg2: i32, %arg3: memref<32x128xbf16, #tpu.memory_space<vmem>>, %arg4: memref<128x128xbf16, #tpu.memory_space<vmem>>, %arg5: memref<1x128xf32, #tpu.memory_space<vmem>>, %arg6: memref<32x128xf32, #tpu.memory_space<vmem>>, %arg7: memref<32x128xf32, #tpu.memory_space<vmem>>) attributes {dimension_semantics = [#tpu.dimension_semantics<parallel>, #tpu.dimension_semantics<parallel>, #tpu.dimension_semantics<arbitrary>], iteration_bounds = array<i64: 1, 1, 1>, scalar_prefetch = 0 : i64, scratch_operands = 1 : i64, tpu.core_type = #tpu.core_type<tc>, window_params = [{transform_indices = @transform_0, window_bounds = array<i64: 32, 128>}, {transform_indices = @transform_1, window_bounds = array<i64: 128, 128>}, {transform_indices = @transform_2, window_bounds = array<i64: 1, 128>}, {transform_indices = @transform_3, window_bounds = array<i64: 32, 128>}]} {
    %c0_i32 = arith.constant 0 : i32
    %0 = arith.cmpi eq, %arg2, %c0_i32 : i32
    %1 = arith.extui %0 : i1 to i32
    %c0_i32_0 = arith.constant 0 : i32
    %2 = arith.cmpi ne, %1, %c0_i32_0 : i32
    scf.if %2 {
      %cst_10 = arith.constant 0.000000e+00 : f32
      %12 = vector.broadcast %cst_10 : f32 to vector<32x128xf32>
      %c0_11 = arith.constant 0 : index
      %c0_12 = arith.constant 0 : index
      %13 = vector.load %arg7[%c0_11, %c0_12] : memref<32x128xf32, #tpu.memory_space<vmem>>, vector<32x128xf32>
      tpu.vector_store %arg7[%c0_11, %c0_12], %12 {strides = array<i32>} : memref<32x128xf32, #tpu.memory_space<vmem>>, vector<32x128xf32>,
    } else {
    }
    %c0 = arith.constant 0 : index
    %c0_1 = arith.constant 0 : index
    %3 = vector.load %arg7[%c0, %c0_1] : memref<32x128xf32, #tpu.memory_space<vmem>>, vector<32x128xf32>
    %c0_2 = arith.constant 0 : index
    %c0_3 = arith.constant 0 : index
    %4 = vector.load %arg3[%c0_2, %c0_3] : memref<32x128xbf16, #tpu.memory_space<vmem>>, vector<32x128xbf16>
    %c0_4 = arith.constant 0 : index
    %c0_5 = arith.constant 0 : index
    %5 = vector.load %arg4[%c0_4, %c0_5] : memref<128x128xbf16, #tpu.memory_space<vmem>>, vector<128x128xbf16>
    %cst = arith.constant dense<0.000000e+00> : vector<32x128xf32>
    %6 = tpu.matmul %4, %5, %cst {dimension_numbers = #tpu.dot_dimension_numbers<[1], [0], [0], [1], [0, 0, 1, 1], [], []>} : vector<32x128xbf16>, vector<128x128xbf16>, vector<32x128xf32> -> vector<32x128xf32>
    %7 = arith.addf %3, %6 : vector<32x128xf32>
    %c0_6 = arith.constant 0 : index
    %c0_7 = arith.constant 0 : index
    %8 = vector.load %arg7[%c0_6, %c0_7] : memref<32x128xf32, #tpu.memory_space<vmem>>, vector<32x128xf32>
    tpu.vector_store %arg7[%c0_6, %c0_7], %7 {strides = array<i32>} : memref<32x128xf32, #tpu.memory_space<vmem>>, vector<32x128xf32>,
    %c0_i32_8 = arith.constant 0 : i32
    %9 = arith.cmpi eq, %arg2, %c0_i32_8 : i32
    %10 = arith.extui %9 : i1 to i32
    %c0_i32_9 = arith.constant 0 : i32
    %11 = arith.cmpi ne, %10, %c0_i32_9 : i32
    scf.if %11 {
      %c0_10 = arith.constant 0 : index
      %c0_11 = arith.constant 0 : index
      %12 = vector.load %arg7[%c0_10, %c0_11] : memref<32x128xf32, #tpu.memory_space<vmem>>, vector<32x128xf32>
      %c0_12 = arith.constant 0 : index
      %c0_13 = arith.constant 0 : index
      %13 = vector.load %arg5[%c0_12, %c0_13] : memref<1x128xf32, #tpu.memory_space<vmem>>, vector<1x128xf32>
      %14 = vector.broadcast %13 : vector<1x128xf32> to vector<32x128xf32>
      %15 = arith.addf %12, %14 : vector<32x128xf32>
      %c0_14 = arith.constant 0 : index
      %c0_15 = arith.constant 0 : index
      %16 = vector.load %arg6[%c0_14, %c0_15] : memref<32x128xf32, #tpu.memory_space<vmem>>, vector<32x128xf32>
      tpu.vector_store %arg6[%c0_14, %c0_15], %15 {strides = array<i32>} : memref<32x128xf32, #tpu.memory_space<vmem>>, vector<32x128xf32>,
    } else {
    }
    return
  }
  func.func @transform_0(%arg0: i32, %arg1: i32, %arg2: i32) -> (i32, i32) {
    %c0_i32 = arith.constant 0 : i32
    return %arg0, %arg2 : i32, i32
  }
  func.func @transform_1(%arg0: i32, %arg1: i32, %arg2: i32) -> (i32, i32) {
    %c0_i32 = arith.constant 0 : i32
    return %arg2, %arg1 : i32, i32
  }
  func.func @transform_2(%arg0: i32, %arg1: i32, %arg2: i32) -> (i32, i32) {
    %c0_i32 = arith.constant 0 : i32
    %c0_i32_0 = arith.constant 0 : i32
    return %c0_i32, %arg1 : i32, i32
  }
  func.func @transform_3(%arg0: i32, %arg1: i32, %arg2: i32) -> (i32, i32) {
    %c0_i32 = arith.constant 0 : i32
    return %arg0, %arg1 : i32, i32
  }
}

</mosaic_0001>

<bundles_post_ra>
// kernel: all_psd_embedding_forward.4
= control target key start
LH: loop header
LB: loop body
LE: loop exit
PB: predicated region body
PF: predicated region fallthrough
CT: control target
= control target key end

     0   :  { %s231_s1 = inlined_call_operand.vmem [shape: bf16[128,128], index: 1, kind: input, shape index: {}]   ;;  %s232_s2 = inlined_call_operand.vmem [shape: f32[1,128], index: 2, kind: input, shape index: {}]   ;;  %s233_s0 = inlined_call_operand.vmem [shape: bf16[16,128], index: 0, kind: input, shape index: {}]   ;;  %s234_s3 = inlined_call_operand.vmem [shape: f32[16,128], index: 3, kind: output, shape index: {}]  }
   0x1   :  { %v173_v0 = vld [vmem:[%s231_s1 + $0x38] sm:$0xff]  ;;  %v172_v1 = vld [vmem:[%s231_s1 + $0x30] sm:$0xff]  ;;  %v171_v2 = vld [vmem:[%s231_s1 + $0x28] sm:$0xff] }
   0x2   :  { %94 = vmatpush.bf16.msra.mxu0 %v173_v0  ;;  %v170_v3 = vld [vmem:[%s231_s1 + $0x20] sm:$0xff]  ;;  %v169_v4 = vld [vmem:[%s231_s1 + $0x18] sm:$0xff]  ;;  %v168_v5 = vld [vmem:[%s231_s1 + $0x10] sm:$0xff] }
   0x3   :  { %v167_v6 = vld [vmem:[%s231_s1 + $0x8] sm:$0xff]  ;;  %v166_v7 = vld [vmem:[%s231_s1] sm:$0xff] }
   0x4   :  { %v165_v8 = vld [vmem:[%s233_s0] sm:$0xff] }
   0x5   :  { %v174_v9 = vld [vmem:[%s232_s2] ss:$0 sm:$0xff] }
   0x6   :  { %95 = vmatpush.bf16.msra.mxu0 %v172_v1 }
   0xa   :  { %96 = vmatpush.bf16.msra.mxu0 %v171_v2 }
   0xe   :  { %97 = vmatpush.bf16.msra.mxu0 %v170_v3 }
  0x12   :  { %98 = vmatpush.bf16.msra.mxu0 %v169_v4 }
  0x16   :  { %99 = vmatpush.bf16.msra.mxu0 %v168_v5 }
  0x1a   :  { %100 = vmatpush.bf16.msra.mxu0 %v167_v6 }
  0x1e   :  { %101 = vmatpush.bf16.msra.mxu0 %v166_v7 }
  0x21   :  { %102 = vmatmul.bf16.vlgmr.msra.gmra.mxu0 %v165_v8 }
  0x9e   :  { %v103_v10 = vpop.f32.mrf.mxu0 }
  0x9f   :  { %v121_v11 = vadd.f32 %v174_v9, %v103_v10 }
  0xa1   :  { %123 = vst [vmem:[%s234_s3] sm:$0xff] %v121_v11 }
  0xa6   :  { %v105_v12 = vpop.f32.mrf.mxu0 }
  0xa7   :  { %v122_v13 = vadd.f32 %v174_v9, %v105_v12 }
  0xa9   :  { %124 = vst [vmem:[%s234_s3 + $0x8] sm:$0xff] %v122_v13 }

// kernel: all_psd_embedding_forward.5
= control target key start
LH: loop header
LB: loop body
LE: loop exit
PB: predicated region body
PF: predicated region fallthrough
CT: control target
= control target key end

     0   :  { %s318_s0 = inlined_call_operand.vmem [shape: bf16[32,128], index: 0, kind: input, shape index: {}]   ;;  %s319_s1 = inlined_call_operand.vmem [shape: bf16[128,128], index: 1, kind: input, shape index: {}]   ;;  %s320_s2 = inlined_call_operand.vmem [shape: f32[1,128], index: 2, kind: input, shape index: {}]   ;;  %s321_s3 = inlined_call_operand.hbm [shape: f32[32,128], index: 3, kind: output, shape index: {}]  }
   0x1   :  { %v220_v0 = vld [vmem:[%s319_s1 + $0x38] sm:$0xff]  ;;  %v219_v1 = vld [vmem:[%s319_s1 + $0x30] sm:$0xff] }
   0x2   :  { %107 = vmatpush.bf16.msra.mxu0 %v220_v0  ;;  %221 = vmatpush.bf16.msra.mxu1 %v220_v0 }
   0x3   :  { %8 = vsyncpa [#allocation4], 0  ;;  %v218_v2 = vld [vmem:[%s319_s1 + $0x28] sm:$0xff]  ;;  %v217_v3 = vld [vmem:[%s319_s1 + $0x20] sm:$0xff]  ;;  %s261_s10 = smov 8  }
   0x4   :  { %v216_v4 = vld [vmem:[%s319_s1 + $0x18] sm:$0xff]  ;;  %v215_v5 = vld [vmem:[%s319_s1 + $0x10] sm:$0xff]  ;;  %v214_v6 = vld [vmem:[%s319_s1 + $0x8] sm:$0xff] }
   0x5   :  { %v213_v7 = vld [vmem:[%s319_s1] sm:$0xff]  ;;  %v212_v9 = vld [vmem:[%s318_s0 + $0x8] sm:$0xff]  ;;  %s259_s1 = smov [#allocation3]  }
   0x6   :  { %108 = vmatpush.bf16.msra.mxu0 %v219_v1  ;;  %222 = vmatpush.bf16.msra.mxu1 %v219_v1  ;;  %v211_v8 = vld [vmem:[%s318_s0] sm:$0xff]  ;;  %s157_s7 = sshll.u32 %s259_s1, 4  ;;  %s159_s0 = sshll.u32 %s321_s3, 4  ;;  %s158_s7 = int_to_ptr.vmem [resolvable:$true] %s157_s7  ;;  %s160_s0 = int_to_ptr.hbm [resolvable:$true] %s159_s0 }
   0x7   :  { %v232_v10 = vld [vmem:[%s320_s2] ss:$0 sm:$0xff]  ;;  %s260_s2 = smov 128  }
   0xa   :  { %109 = vmatpush.bf16.msra.mxu0 %v218_v2  ;;  %223 = vmatpush.bf16.msra.mxu1 %v218_v2 }
   0xe   :  { %110 = vmatpush.bf16.msra.mxu0 %v217_v3  ;;  %224 = vmatpush.bf16.msra.mxu1 %v217_v3 }
  0x12   :  { %111 = vmatpush.bf16.msra.mxu0 %v216_v4  ;;  %225 = vmatpush.bf16.msra.mxu1 %v216_v4 }
  0x16   :  { %112 = vmatpush.bf16.msra.mxu0 %v215_v5  ;;  %226 = vmatpush.bf16.msra.mxu1 %v215_v5 }
  0x1a   :  { %113 = vmatpush.bf16.msra.mxu0 %v214_v6  ;;  %227 = vmatpush.bf16.msra.mxu1 %v214_v6 }
  0x1e   :  { %114 = vmatpush.bf16.msra.mxu0 %v213_v7  ;;  %228 = vmatpush.bf16.msra.mxu1 %v213_v7 }
  0x21   :  { %115 = vmatmul.bf16.vlgmr.msra.gmra.mxu0 %v211_v8  ;;  %120 = vmatmul.bf16.vlgmr.msra.gmra.mxu1 %v212_v9 }
  0x9e   :  { %v116_v11 = vpop.f32.mrf.mxu0  ;;  %v121_v12 = vpop.f32.mrf.mxu1 }
  0x9f   :  { %v145_v13 = vadd.f32 %v232_v10, %v116_v11  ;;  %v147_v14 = vadd.f32 %v232_v10, %v121_v12 }
  0xa1   :  { %149 = vst [vmem:[#allocation3] sm:$0xff] %v145_v13 }
  0xa2   :  { %151 = vst [vmem:[#allocation3 + $0x10] sm:$0xff] %v147_v14 }
  0xa6   :  { %v118_v15 = vpop.f32.mrf.mxu0  ;;  %v123_v16 = vpop.f32.mrf.mxu1 }
  0xa7   :  { %v146_v17 = vadd.f32 %v232_v10, %v118_v15  ;;  %v148_v18 = vadd.f32 %v232_v10, %v123_v16 }
  0xa9   :  { %150 = vst [vmem:[#allocation3 + $0x8] sm:$0xff] %v146_v17 }
  0xaa   :  { %152 = vst [vmem:[#allocation3 + $0x18] sm:$0xff] %v148_v18 }
  0xab   :  { %165 = dma.vmem_to_hbm [thread:$0]  %s158_s7, 512, %s160_s0, [#allocation4], %s260_s2, %s260_s2, %s261_s10  }
  0xac   :  { %257 = dma.done.wait [#allocation4], 512  }
  0xad   :  { %258 = vsyncadd [#allocation4], 4294966784 }
  0xae   :  { %170 = vsyncpa [#allocation4], 1 }

</bundles_post_ra>
